<compile_context>
chip_gen: v6e
topology: v6e:2x2x1
jax: 0.10.0
libtpu: 0.0.40
codegen_flags: <defaults>
</compile_context>

<pallas_src>
import jax
import jax.numpy as jnp
from jax.experimental import pallas as pl
from jax.experimental.pallas import tpu as pltpu


def mlp_kernel(x_ref, w1_ref, b1_ref, w2_ref, b2_ref, w3_ref, b3_ref, w4_ref, o_ref):
    # x_ref: (TB, in) bf16 row tile. Weights bf16, biases f32, output f32 (lane-padded).
    x = x_ref[...]

    h = jnp.dot(x, w1_ref[...], preferred_element_type=jnp.float32) + b1_ref[...]
    h = jnp.tanh(h).astype(jnp.bfloat16)

    h = jnp.dot(h, w2_ref[...], preferred_element_type=jnp.float32) + b2_ref[...]
    h = jnp.tanh(h).astype(jnp.bfloat16)

    h = jnp.dot(h, w3_ref[...], preferred_element_type=jnp.float32) + b3_ref[...]
    h = jnp.tanh(h).astype(jnp.bfloat16)

    y = jnp.dot(h, w4_ref[...], preferred_element_type=jnp.float32)  # final layer: no bias
    o_ref[...] = y.astype(o_ref.dtype)


def network_forward(x, params, *, tile_b=512):
    """x: [B, input_size] float32. params: dict of pre-transposed f32 weights/biases."""
    B, in_size = x.shape
    out_size = params["w4"].shape[1]
    out_pad = ((out_size + 127) // 128) * 128  # lane-dense output width (>=128)

    # Batch tile: full-extent if small, else tile_b (multiple of 8) with cdiv grid.
    TB = B if B <= tile_b else tile_b
    grid = (pl.cdiv(B, TB),)

    # bf16 operands for the MXU; biases stay f32 for the epilogue.
    bf = jnp.bfloat16
    xb = x.astype(bf)
    w1 = params["w1"].astype(bf)
    w2 = params["w2"].astype(bf)
    w3 = params["w3"].astype(bf)
    w4 = jnp.pad(params["w4"], ((0, 0), (0, out_pad - out_size))).astype(bf)
    b1 = params["b1"].astype(jnp.float32)
    b2 = params["b2"].astype(jnp.float32)
    b3 = params["b3"].astype(jnp.float32)

    def row_spec(feat):
        # Batch-tiled block; marches along the batch axis with the grid.
        return pl.BlockSpec((TB, feat), lambda i: (i, 0))

    def pinned(shape):
        # Same block every grid step -> stays resident in VMEM (no re-DMA).
        return pl.BlockSpec(shape, lambda i: (0, 0))

    out_padded = pl.pallas_call(
        mlp_kernel,
        out_shape=jax.ShapeDtypeStruct((B, out_pad), jnp.float32),
        grid=grid,
        in_specs=[
            row_spec(in_size),
            pinned(w1.shape), pinned(b1.shape),
            pinned(w2.shape), pinned(b2.shape),
            pinned(w3.shape), pinned(b3.shape),
            pinned(w4.shape),
        ],
        out_specs=pl.BlockSpec((TB, out_pad), lambda i: (i, 0)),
        compiler_params=pltpu.CompilerParams(
            dimension_semantics=("parallel",),
        ),
    )(xb, w1, b1, w2, b2, w3, b3, w4)

    return out_padded[:, :out_size]


def reference_forward_bf16(x, params):
    """Plain-JAX reference with the same bf16-matmul / f32-accumulate semantics."""
    bf = jnp.bfloat16
    h = jnp.tanh(jnp.dot(x.astype(bf), params["w1"].astype(bf),
                         preferred_element_type=jnp.float32) + params["b1"])
    h = jnp.tanh(jnp.dot(h.astype(bf), params["w2"].astype(bf),
                         preferred_element_type=jnp.float32) + params["b2"])
    h = jnp.tanh(jnp.dot(h.astype(bf), params["w3"].astype(bf),
                         preferred_element_type=jnp.float32) + params["b3"])
    return jnp.dot(h.astype(bf), params["w4"].astype(bf),
                   preferred_element_type=jnp.float32)


def reference_forward_f32(x, params):
    """Full-f32 reference matching the original PyTorch module's math."""
    h = jnp.tanh(x @ params["w1"] + params["b1"])
    h = jnp.tanh(h @ params["w2"] + params["b2"])
    h = jnp.tanh(h @ params["w3"] + params["b3"])
    return h @ params["w4"]


def init_params(key, input_size, hidden_size1, hidden_size2, output_size):
    """Deterministic init mimicking nn.Linear's U(-1/sqrt(fan_in), 1/sqrt(fan_in)).
    Weights stored as [in_features, out_features] (already transposed)."""
    ks = jax.random.split(key, 7)

    def lin_w(k, fan_in, fan_out):
        bound = 1.0 / jnp.sqrt(fan_in)
        return jax.random.uniform(k, (fan_in, fan_out), jnp.float32, -bound, bound)

    def lin_b(k, fan_in, fan_out):
        bound = 1.0 / jnp.sqrt(fan_in)
        return jax.random.uniform(k, (1, fan_out), jnp.float32, -bound, bound)

    return {
        "w1": lin_w(ks[0], input_size, hidden_size1),
        "b1": lin_b(ks[1], input_size, hidden_size1),
        "w2": lin_w(ks[2], hidden_size1, hidden_size2),
        "b2": lin_b(ks[3], hidden_size1, hidden_size2),
        "w3": lin_w(ks[4], hidden_size2, hidden_size2),
        "b3": lin_b(ks[5], hidden_size2, hidden_size2),
        "w4": lin_w(ks[6], hidden_size2, output_size),  # layer4: bias=False
    }


if __name__ == "__main__":
    # Small shapes consistent with the module's constructor signature.
    input_size, hidden_size1, hidden_size2, output_size = 4, 32, 32, 2

    key = jax.random.PRNGKey(0)
    k_x, k_p, k_xl = jax.random.split(key, 3)
    params = init_params(k_p, input_size, hidden_size1, hidden_size2, output_size)

    # --- Small-batch check (single grid step, full-extent batch tile) ---
    batch = 8
    x = jax.random.normal(k_x, (batch, input_size), dtype=jnp.float32)
    out = network_forward(x, params)
    jax.block_until_ready(out)
    assert out.shape == (batch, output_size)
    ref_bf = reference_forward_bf16(x, params)
    ref_f32 = reference_forward_f32(x, params)
    assert jnp.allclose(out, ref_bf, atol=2e-3, rtol=2e-3)
    assert jnp.allclose(out, ref_f32, atol=1e-1, rtol=1e-1)

    # --- Multi-tile check (exercises the batch grid / pinned weights path) ---
    batch_l = 2048
    xl = jax.random.normal(k_xl, (batch_l, input_size), dtype=jnp.float32)
    out_l = network_forward(xl, params, tile_b=512)  # grid of 4 steps
    jax.block_until_ready(out_l)
    assert out_l.shape == (batch_l, output_size)
    ref_l = reference_forward_bf16(xl, params)
    assert jnp.allclose(out_l, ref_l, atol=2e-3, rtol=2e-3)

    print("KERNEL_OK")
</pallas_src>

<mosaic_0001>
module attributes {stable_mosaic.version = 11 : i64} {
  func.func @mlp_kernel(%arg0: i32, %arg1: memref<8x4xbf16, #tpu.memory_space<vmem>>, %arg2: memref<4x32xbf16, #tpu.memory_space<vmem>>, %arg3: memref<1x32xf32, #tpu.memory_space<vmem>>, %arg4: memref<32x32xbf16, #tpu.memory_space<vmem>>, %arg5: memref<1x32xf32, #tpu.memory_space<vmem>>, %arg6: memref<32x32xbf16, #tpu.memory_space<vmem>>, %arg7: memref<1x32xf32, #tpu.memory_space<vmem>>, %arg8: memref<32x128xbf16, #tpu.memory_space<vmem>>, %arg9: memref<8x128xf32, #tpu.memory_space<vmem>>) attributes {dimension_semantics = [#tpu.dimension_semantics<parallel>], iteration_bounds = array<i64: 1>, scalar_prefetch = 0 : i64, scratch_operands = 0 : i64, tpu.core_type = #tpu.core_type<tc>, window_params = [{transform_indices = @transform_0, window_bounds = array<i64: 8, 4>}, {pipeline_mode = #tpu.pipeline_mode<synchronous>, transform_indices = @transform_1, window_bounds = array<i64: 4, 32>}, {pipeline_mode = #tpu.pipeline_mode<synchronous>, transform_indices = @transform_2, window_bounds = array<i64: 1, 32>}, {pipeline_mode = #tpu.pipeline_mode<synchronous>, transform_indices = @transform_3, window_bounds = array<i64: 32, 32>}, {pipeline_mode = #tpu.pipeline_mode<synchronous>, transform_indices = @transform_4, window_bounds = array<i64: 1, 32>}, {pipeline_mode = #tpu.pipeline_mode<synchronous>, transform_indices = @transform_5, window_bounds = array<i64: 32, 32>}, {pipeline_mode = #tpu.pipeline_mode<synchronous>, transform_indices = @transform_6, window_bounds = array<i64: 1, 32>}, {pipeline_mode = #tpu.pipeline_mode<synchronous>, transform_indices = @transform_7, window_bounds = array<i64: 32, 128>}, {transform_indices = @transform_8, window_bounds = array<i64: 8, 128>}]} {
    %c0 = arith.constant 0 : index
    %c0_0 = arith.constant 0 : index
    %0 = vector.load %arg1[%c0, %c0_0] : memref<8x4xbf16, #tpu.memory_space<vmem>>, vector<8x4xbf16>
    %c0_1 = arith.constant 0 : index
    %c0_2 = arith.constant 0 : index
    %1 = vector.load %arg2[%c0_1, %c0_2] : memref<4x32xbf16, #tpu.memory_space<vmem>>, vector<4x32xbf16>
    %cst = arith.constant dense<0.000000e+00> : vector<8x32xf32>
    %2 = tpu.matmul %0, %1, %cst {dimension_numbers = #tpu.dot_dimension_numbers<[1], [0], [0], [1], [0, 0, 1, 1], [], []>} : vector<8x4xbf16>, vector<4x32xbf16>, vector<8x32xf32> -> vector<8x32xf32>
    %c0_3 = arith.constant 0 : index
    %c0_4 = arith.constant 0 : index
    %3 = vector.load %arg3[%c0_3, %c0_4] : memref<1x32xf32, #tpu.memory_space<vmem>>, vector<1x32xf32>
    %4 = vector.broadcast %3 : vector<1x32xf32> to vector<8x32xf32>
    %5 = arith.addf %2, %4 : vector<8x32xf32>
    %6 = math.tanh %5 : vector<8x32xf32>
    %7 = arith.truncf %6 : vector<8x32xf32> to vector<8x32xbf16>
    %c0_5 = arith.constant 0 : index
    %c0_6 = arith.constant 0 : index
    %8 = vector.load %arg4[%c0_5, %c0_6] : memref<32x32xbf16, #tpu.memory_space<vmem>>, vector<32x32xbf16>
    %cst_7 = arith.constant dense<0.000000e+00> : vector<8x32xf32>
    %9 = tpu.matmul %7, %8, %cst_7 {dimension_numbers = #tpu.dot_dimension_numbers<[1], [0], [0], [1], [0, 0, 1, 1], [], []>} : vector<8x32xbf16>, vector<32x32xbf16>, vector<8x32xf32> -> vector<8x32xf32>
    %c0_8 = arith.constant 0 : index
    %c0_9 = arith.constant 0 : index
    %10 = vector.load %arg5[%c0_8, %c0_9] : memref<1x32xf32, #tpu.memory_space<vmem>>, vector<1x32xf32>
    %11 = vector.broadcast %10 : vector<1x32xf32> to vector<8x32xf32>
    %12 = arith.addf %9, %11 : vector<8x32xf32>
    %13 = math.tanh %12 : vector<8x32xf32>
    %14 = arith.truncf %13 : vector<8x32xf32> to vector<8x32xbf16>
    %c0_10 = arith.constant 0 : index
    %c0_11 = arith.constant 0 : index
    %15 = vector.load %arg6[%c0_10, %c0_11] : memref<32x32xbf16, #tpu.memory_space<vmem>>, vector<32x32xbf16>
    %cst_12 = arith.constant dense<0.000000e+00> : vector<8x32xf32>
    %16 = tpu.matmul %14, %15, %cst_12 {dimension_numbers = #tpu.dot_dimension_numbers<[1], [0], [0], [1], [0, 0, 1, 1], [], []>} : vector<8x32xbf16>, vector<32x32xbf16>, vector<8x32xf32> -> vector<8x32xf32>
    %c0_13 = arith.constant 0 : index
    %c0_14 = arith.constant 0 : index
    %17 = vector.load %arg7[%c0_13, %c0_14] : memref<1x32xf32, #tpu.memory_space<vmem>>, vector<1x32xf32>
    %18 = vector.broadcast %17 : vector<1x32xf32> to vector<8x32xf32>
    %19 = arith.addf %16, %18 : vector<8x32xf32>
    %20 = math.tanh %19 : vector<8x32xf32>
    %21 = arith.truncf %20 : vector<8x32xf32> to vector<8x32xbf16>
    %c0_15 = arith.constant 0 : index
    %c0_16 = arith.constant 0 : index
    %22 = vector.load %arg8[%c0_15, %c0_16] : memref<32x128xbf16, #tpu.memory_space<vmem>>, vector<32x128xbf16>
    %cst_17 = arith.constant dense<0.000000e+00> : vector<8x128xf32>
    %23 = tpu.matmul %21, %22, %cst_17 {dimension_numbers = #tpu.dot_dimension_numbers<[1], [0], [0], [1], [0, 0, 1, 1], [], []>} : vector<8x32xbf16>, vector<32x128xbf16>, vector<8x128xf32> -> vector<8x128xf32>
    %c0_18 = arith.constant 0 : index
    %c0_19 = arith.constant 0 : index
    %24 = vector.load %arg9[%c0_18, %c0_19] : memref<8x128xf32, #tpu.memory_space<vmem>>, vector<8x128xf32>
    tpu.vector_store %arg9[%c0_18, %c0_19], %23 {strides = array<i32>} : memref<8x128xf32, #tpu.memory_space<vmem>>, vector<8x128xf32>,
    return
  }
  func.func @transform_0(%arg0: i32) -> (i32, i32) {
    %c0_i32 = arith.constant 0 : i32
    %c0_i32_0 = arith.constant 0 : i32
    return %arg0, %c0_i32 : i32, i32
  }
  func.func @transform_1(%arg0: i32) -> (i32, i32) {
    %c0_i32 = arith.constant 0 : i32
    %c0_i32_0 = arith.constant 0 : i32
    %c0_i32_1 = arith.constant 0 : i32
    return %c0_i32, %c0_i32_0 : i32, i32
  }
  func.func @transform_2(%arg0: i32) -> (i32, i32) {
    %c0_i32 = arith.constant 0 : i32
    %c0_i32_0 = arith.constant 0 : i32
    %c0_i32_1 = arith.constant 0 : i32
    return %c0_i32, %c0_i32_0 : i32, i32
  }
  func.func @transform_3(%arg0: i32) -> (i32, i32) {
    %c0_i32 = arith.constant 0 : i32
    %c0_i32_0 = arith.constant 0 : i32
    %c0_i32_1 = arith.constant 0 : i32
    return %c0_i32, %c0_i32_0 : i32, i32
  }
  func.func @transform_4(%arg0: i32) -> (i32, i32) {
    %c0_i32 = arith.constant 0 : i32
    %c0_i32_0 = arith.constant 0 : i32
    %c0_i32_1 = arith.constant 0 : i32
    return %c0_i32, %c0_i32_0 : i32, i32
  }
  func.func @transform_5(%arg0: i32) -> (i32, i32) {
    %c0_i32 = arith.constant 0 : i32
    %c0_i32_0 = arith.constant 0 : i32
    %c0_i32_1 = arith.constant 0 : i32
    return %c0_i32, %c0_i32_0 : i32, i32
  }
  func.func @transform_6(%arg0: i32) -> (i32, i32) {
    %c0_i32 = arith.constant 0 : i32
    %c0_i32_0 = arith.constant 0 : i32
    %c0_i32_1 = arith.constant 0 : i32
    return %c0_i32, %c0_i32_0 : i32, i32
  }
  func.func @transform_7(%arg0: i32) -> (i32, i32) {
    %c0_i32 = arith.constant 0 : i32
    %c0_i32_0 = arith.constant 0 : i32
    %c0_i32_1 = arith.constant 0 : i32
    return %c0_i32, %c0_i32_0 : i32, i32
  }
  func.func @transform_8(%arg0: i32) -> (i32, i32) {
    %c0_i32 = arith.constant 0 : i32
    %c0_i32_0 = arith.constant 0 : i32
    return %arg0, %c0_i32 : i32, i32
  }
}

</mosaic_0001>

<bundles_post_ra>
// kernel: tpu_custom_call.1
= control target key start
LH: loop header
LB: loop body
LE: loop exit
PB: predicated region body
PF: predicated region fallthrough
CT: control target
= control target key end

     0   :  { %13 = vsyncpa [#allocation3], 0  ;;  %s662_s0 = inlined_call_operand.vmem [shape: bf16[8,4], index: 0, kind: input, shape index: {}]   ;;  %s663_s1 = inlined_call_operand.vmem [shape: bf16[4,32], index: 1, kind: input, shape index: {}]   ;;  %s664_s2 = inlined_call_operand.hbm [shape: f32[1,32], index: 2, kind: input, shape index: {}]   ;;  %s665_s3 = inlined_call_operand.hbm [shape: bf16[32,32], index: 3, kind: input, shape index: {}]   ;;  %s666_s4 = inlined_call_operand.hbm [shape: f32[1,32], index: 4, kind: input, shape index: {}]   ;;  %s667_s5 = inlined_call_operand.hbm [shape: bf16[32,32], index: 5, kind: input, shape index: {}]   ;;  %s668_s6 = inlined_call_operand.hbm [shape: f32[1,32], index: 6, kind: input, shape index: {}]   ;;  %s669_s7 = inlined_call_operand.vmem [shape: bf16[32,128], index: 7, kind: input, shape index: {}]   ;;  %s670_s8 = inlined_call_operand.hbm [shape: f32[8,128], index: 8, kind: output, shape index: {}]  }
   0x1   :  { %14 = vsyncpa [#allocation6], 0 }
   0x2   :  { %15 = vsyncpa [#allocation9], 0 }
   0x3   :  { %16 = vsyncpa [#allocation4], 0  ;;  %s570_s27 = smov [#allocation5]  }
   0x4   :  { %s36_s28 = sshll.u32 %s570_s27, 4  ;;  %s37_s28 = int_to_ptr.vmem [resolvable:$true] %s36_s28 }
   0x5   :  { %s450_s29 = scalar_lea.vmem %s37_s28, 256  ;;  %p455_p1 = scmp.lt.s32.totalorder %s37_s28, %s37_s28 }
   0x6   :  { %p451_p0 = scmp.ne.s32.totalorder %s37_s28, %s450_s29  ;;  %p456_p2 = scmp.lt.s32.totalorder %s450_s29, %s450_s29 }
   0x8   :  { %p457_p3 = por %p456_p2, %p455_p1 }
   0xa   :  { %p458_p4 = pnand %p457_p3, %p451_p0 }
   0xc   :  { %461 = shalt.err (!%p458_p4)
}
   0xd   :  { %s571_s30 = smov 64   ;;  %s572_s9 = smov 4  }
   0xe   :  { %42 = dma.hbm_to_vmem [thread:$0]  %s665_s3, 256, %s37_s28, [#allocation6], %s571_s30, %s571_s30, %s572_s9  }
   0xf   :  { %s573_s12 = smov [#allocation8]   ;;  %s574_s14 = smov [#allocation2]  }
  0x10   :  { %s58_s13 = sshll.u32 %s573_s12, 4  ;;  %s27_s15 = sshll.u32 %s574_s14, 4  ;;  %s59_s13 = int_to_ptr.vmem [resolvable:$true] %s58_s13  ;;  %s28_s15 = int_to_ptr.vmem [resolvable:$true] %s27_s15 }
  0x11   :  { %s470_s16 = scalar_lea.vmem %s59_s13, 256  ;;  %p475_p6 = scmp.lt.s32.totalorder %s59_s13, %s59_s13 }
  0x12   :  { %p471_p5 = scmp.ne.s32.totalorder %s59_s13, %s470_s16  ;;  %p476_p7 = scmp.lt.s32.totalorder %s470_s16, %s470_s16 }
  0x14   :  { %p477_p8 = por %p476_p7, %p475_p6 }
  0x16   :  { %p478_p9 = pnand %p477_p8, %p471_p5 }
  0x18   :  { %481 = shalt.err (!%p478_p9)
}
  0x19   :  { %64 = dma.hbm_to_vmem [thread:$0]  %s667_s5, 256, %s59_s13, [#allocation9], %s571_s30, %s571_s30, %s572_s9  }
  0x1a   :  { %s490_s19 = scalar_lea.vmem %s28_s15, 16  ;;  %s494_s3 = scalar_lea.vmem %s28_s15, 32 }
  0x1b   :  { %p491_p10 = scmp.ne.s32.totalorder %s28_s15, %s490_s19  ;;  %p495_p11 = scmp.lt.s32.totalorder %s28_s15, %s28_s15 }
  0x1c   :  { %p496_p12 = scmp.lt.s32.totalorder %s494_s3, %s490_s19 }
  0x1e   :  { %p497_p13 = por %p496_p12, %p495_p11 }
  0x20   :  { %p498_p0 = pnand %p497_p13, %p491_p10 }
  0x22   :  { %501 = shalt.err (!%p498_p0)
}
  0x23   :  { %30 = dma.hbm_to_vmem [thread:$0]  %s664_s2, 16, %s28_s15, [#allocation3]  }
  0x24   :  { %s575_s22 = smov [#allocation7]   ;;  %s576_s24 = smov [#allocation10]  }
  0x25   :  { %s49_s23 = sshll.u32 %s575_s22, 4  ;;  %s71_s25 = sshll.u32 %s576_s24, 4  ;;  %s50_s23 = int_to_ptr.vmem [resolvable:$true] %s49_s23  ;;  %s72_s25 = int_to_ptr.vmem [resolvable:$true] %s71_s25 }
  0x26   :  { %s510_s26 = scalar_lea.vmem %s50_s23, 16  ;;  %s514_s5 = scalar_lea.vmem %s50_s23, 32 }
  0x27   :  { %p511_p1 = scmp.ne.s32.totalorder %s50_s23, %s510_s26  ;;  %p515_p2 = scmp.lt.s32.totalorder %s50_s23, %s50_s23 }
  0x28   :  { %p516_p3 = scmp.lt.s32.totalorder %s514_s5, %s510_s26 }
  0x2a   :  { %p517_p4 = por %p516_p3, %p515_p2 }
  0x2c   :  { %p518_p5 = pnand %p517_p4, %p511_p1 }
  0x2e   :  { %521 = shalt.err (!%p518_p5)
}
  0x2f   :  { %52 = dma.hbm_to_vmem [thread:$0]  %s666_s4, 16, %s50_s23, [#allocation6]  }
  0x30   :  { %s530_s29 = scalar_lea.vmem %s72_s25, 16  ;;  %s534_s2 = scalar_lea.vmem %s72_s25, 32 }
  0x31   :  { %p531_p6 = scmp.ne.s32.totalorder %s72_s25, %s530_s29  ;;  %p535_p7 = scmp.lt.s32.totalorder %s72_s25, %s72_s25 }
  0x32   :  { %p536_p8 = scmp.lt.s32.totalorder %s534_s2, %s530_s29 }
  0x34   :  { %p537_p9 = por %p536_p8, %p535_p7 }
  0x36   :  { %p538_p10 = pnand %p537_p9, %p531_p6 }
  0x38   :  { %541 = shalt.err (!%p538_p10)
}
  0x39   :  { %74 = dma.hbm_to_vmem [thread:$0]  %s668_s6, 16, %s72_s25, [#allocation9]  }
  0x3a   :  { %562 = dma.done.wait [#allocation3], 16  }
  0x3b   :  { %563 = vsyncadd [#allocation3], 4294967280 }
  0x3c   :  { %564 = dma.done.wait [#allocation6], 272  }
  0x3d   :  { %565 = vsyncadd [#allocation6], 4294967024 }
  0x3e   :  { %566 = dma.done.wait [#allocation9], 272  }
  0x3f   :  { %567 = vsyncadd [#allocation9], 4294967024  ;;  %v577_v0 = vmov 0.0   ;;  %vm578_vm0 = vmmov 0   ;;  %vm106_vm1 = vcmask 1041408   ;;  %vm102_vm2 = vcmask 31744  }
  0x40   :  { %390 = vmatprep.subr.bf16.mxu0 %v577_v0  ;;  %392 = vmatprep.mubr.msk.bf16.mxu0 %vm578_vm0, %v577_v0  ;;  %v94_v1 = vld [vmem:[%s663_s1] sm:$0x3]  ;;  %v430_v4 = vld [vmem:[#allocation5 + $0x8] sm:$0xff]   ;;  %v431_v5 = vld [vmem:[#allocation5] sm:$0xff]   ;;  %vm175_vm3 = vcmask 261120   ;;  %s579_s14 = smov [#allocation11]  }
  0x41   :  { %396 = vmatprep.subr.bf16.mxu1 %v577_v0  ;;  %400 = vmatprep.mubr.msk.bf16.mxu1 %vm578_vm0, %v577_v0  ;;  %v93_v2 = vld [vmem:[%s662_s0] sm:$0xf]  ;;  %v108_v3 = vsel %vm106_vm1, %v94_v1, 0  ;;  %v433_v15 = vld [vmem:[#allocation8] sm:$0xff]   ;;  %v368_v16 = vld [vmem:[#allocation7] ss:$0 sm:$0xff] }
  0x42   :  { %391 = vmatpush3.bf16.msra.mxu0 %v108_v3  ;;  %397 = vmatpush3.bf16.msra.mxu1 %v430_v4  ;;  %v366_v6 = vld [vmem:[#allocation2] ss:$0 sm:$0xff]  ;;  %v434_v24 = vld [vmem:[%s669_s7 + $0x8] sm:$0xff]   ;;  %v372_v26 = vld [vmem:[#allocation10] ss:$0 sm:$0xff]  ;;  %s355_s15 = sshll.u32 %s579_s14, 4  ;;  %s356_s15 = int_to_ptr.vmem [resolvable:$true] %s355_s15 }
  0x43   :  { %404 = vmatprep.subr.bf16.mxu0 %v577_v0  ;;  %398 = vmatprep.subr.bf16.mxu1 %v577_v0  ;;  %v432_v14 = vld [vmem:[#allocation8 + $0x8] sm:$0xff]   ;;  %s542_s16 = scalar_lea.vmem %s356_s15, 128  ;;  %p547_p12 = scmp.lt.s32.totalorder %s356_s15, %s356_s15 }
  0x44   :  { %v435_v25 = vld [vmem:[%s669_s7] sm:$0xff]   ;;  %p543_p11 = scmp.ne.s32.totalorder %s356_s15, %s542_s16  ;;  %p548_p13 = scmp.lt.s32.totalorder %s542_s16, %s542_s16 }
  0x45   :  { %393 = vmatmul.mubr.msk.bf16.vlgmr.msra.gmra.mxu0 %vm102_vm2, %v93_v2 }
  0x46   :  { %408 = vmatprep.mubr.msk.bf16.mxu0 %vm578_vm0, %v577_v0  ;;  %399 = vmatpush3.bf16.msra.mxu1 %v431_v5  ;;  %p549_p0 = por %p548_p13, %p547_p12 }
  0x47   :  { %412 = vmatprep.subr.bf16.mxu1 %v577_v0  ;;  %405 = vmatpush3.bf16.msra.mxu0 %v432_v14 }
  0x48   :  { %406 = vmatprep.subr.bf16.mxu0 %v577_v0  ;;  %p550_p1 = pnand %p549_p0, %p543_p11 }
  0x4b   :  { %407 = vmatpush3.bf16.msra.mxu0 %v433_v15 }
 0x105   :  { %v144_v7 = vpop.f32.mrf.mxu0 }
 0x106   :  { %v145_v8 = vadd.f32 %v366_v6, %v144_v7 }
 0x107   :  { %v394_v9 = vpop.f32.mrf.mxu0 }
 0x108   :  { %436 = vtanh.f32 %v145_v8 }
 0x109   :  { %v147_v10 = vpop.f32.mrf.mxu0 }
 0x10b   :  { %v395_v11 = vpop.f32.mrf.mxu0 }
 0x115   :  { %v437_v12 = vpop.eup %436 }
 0x116   :  { %v151_v13 = vpack.c.bf16 %v437_v12, %v437_v12 }
 0x118   :  { %401 = vmatmul.mubr.msk.bf16.vlgmr.msra.gmra.mxu1 %vm175_vm3, %v151_v13 }
 0x119   :  { %416 = vmatprep.mubr.msk.bf16.mxu1 %vm578_vm0, %v577_v0  ;;  %413 = vmatpush3.bf16.msra.mxu1 %v434_v24 }
 0x11a   :  { %414 = vmatprep.subr.bf16.mxu1 %v577_v0 }
 0x11d   :  { %415 = vmatpush3.bf16.msra.mxu1 %v435_v25 }
 0x1d8   :  { %v213_v17 = vpop.f32.mrf.mxu1 }
 0x1d9   :  { %v214_v18 = vadd.f32 %v368_v16, %v213_v17 }
 0x1da   :  { %v402_v19 = vpop.f32.mrf.mxu1 }
 0x1db   :  { %438 = vtanh.f32 %v214_v18 }
 0x1dc   :  { %v216_v20 = vpop.f32.mrf.mxu1 }
 0x1de   :  { %v403_v21 = vpop.f32.mrf.mxu1 }
 0x1e8   :  { %v439_v22 = vpop.eup %438 }
 0x1e9   :  { %v220_v23 = vpack.c.bf16 %v439_v22, %v439_v22 }
 0x1eb   :  { %409 = vmatmul.mubr.msk.bf16.vlgmr.msra.gmra.mxu0 %vm175_vm3, %v220_v23 }
 0x2ab   :  { %v281_v27 = vpop.f32.mrf.mxu0 }
 0x2ac   :  { %v282_v28 = vadd.f32 %v372_v26, %v281_v27 }
 0x2ad   :  { %v410_v29 = vpop.f32.mrf.mxu0 }
 0x2ae   :  { %440 = vtanh.f32 %v282_v28 }
 0x2af   :  { %v284_v30 = vpop.f32.mrf.mxu0 }
 0x2b1   :  { %v411_v31 = vpop.f32.mrf.mxu0 }
 0x2bb   :  { %v441_v32 = vpop.eup %440 }
 0x2bc   :  { %v288_v33 = vpack.c.bf16 %v441_v32, %v441_v32 }
 0x2be   :  { %417 = vmatmul.mubr.msk.bf16.vlgmr.msra.gmra.mxu1 %vm175_vm3, %v288_v33 }
 0x37e   :  { %v342_v34 = vpop.f32.mrf.mxu1 }
 0x37f   :  { %348 = vst [vmem:[#allocation11] sm:$0xff] %v342_v34 }
 0x380   :  { %v418_v35 = vpop.f32.mrf.mxu1 }
 0x381   :  { %553 = shalt.err (!%p550_p1)
}
 0x382   :  { %358 = dma.vmem_to_hbm [thread:$0]  %s356_s15, 128, %s670_s8, [#allocation4]   ;;  %v345_v36 = vpop.f32.mrf.mxu1 }
 0x384   :  { %v419_v37 = vpop.f32.mrf.mxu1 }
 0x385   :  { %568 = dma.done.wait [#allocation4], 128  }
 0x386   :  { %569 = vsyncadd [#allocation4], 4294967168 }
 0x387   :  { %362 = vsyncpa [#allocation3], 1 }
 0x388   :  { %363 = vsyncpa [#allocation6], 1 }
 0x389   :  { %364 = vsyncpa [#allocation9], 1 }
 0x38a   :  { %365 = vsyncpa [#allocation4], 1 }

</bundles_post_ra>
